<compile_context>
chip_gen: v5e
topology: v5e:2x2
jax: 0.10.0
libtpu: 0.0.40
codegen_flags: <defaults>
</compile_context>

<pallas_src>
import jax
import jax.numpy as jnp
from jax.experimental import pallas as pl
from jax.experimental.pallas import tpu as pltpu

IN_DIM = 300
HID_DIM = IN_DIM // 2        # 150
OUT_DIM = 1


def _round_up(x, m):
    return ((x + m - 1) // m) * m


def _choose_tile(B, *, tm_max=2048, target_grid=4):
    """Batch (sublane) tile: multiple of 8, capped at tm_max, aiming for
    >= target_grid grid steps on big batches while minimizing row padding."""
    B8 = _round_up(B, 8)
    tm = _round_up(pl.cdiv(B8, target_grid), 8)
    return max(8, min(tm, tm_max, B8))


def spectral_mlp_kernel(x_ref, w1t_ref, b1_ref, w2_ref, b2_ref, o_ref):
    # x_ref  : (tm, 300)   spectrum tile, batch on sublanes (native layout)
    # w1t_ref: (300, 150)  layer-1 weight, transposed once at param-prep time
    # b1_ref : (1, 150)    layer-1 bias (row, broadcast across sublanes)
    # w2_ref : (1, 150)    layer-2 weight (row)
    # b2_ref : (1, 1)
    # o_ref  : (tm, 1)     module-native output layout
    h = jnp.dot(x_ref[...], w1t_ref[...],
                preferred_element_type=jnp.float32)          # MXU, K=300 masked
    h = jnp.maximum(h + b1_ref[...], 0.0)                    # bias + ReLU (VPU)
    # Layer 2 (output width 1): VPU multiply + cross-lane reduce (XLU)
    z = jnp.sum(h * w2_ref[...], axis=-1, keepdims=True) + b2_ref[...]
    o_ref[...] = jax.nn.sigmoid(z).astype(o_ref.dtype)       # Sigmoid (EUP exp)


def prepare_params(w1, b1, w2, b2):
    """One-time parameter plumbing (hoisted out of the per-call path).
    PyTorch nn.Linear layout in: w1 (150,300), b1 (150,), w2 (1,150), b2 (1,)."""
    return dict(
        w1t=jnp.asarray(w1, jnp.float32).T,                      # (300, 150)
        b1=jnp.asarray(b1, jnp.float32).reshape(1, HID_DIM),     # (1, 150)
        w2=jnp.asarray(w2, jnp.float32).reshape(1, HID_DIM),     # (1, 150)
        b2=jnp.asarray(b2, jnp.float32).reshape(1, 1),           # (1, 1)
    )


def spectral_mlp(spectrum, params, *, tm_max=2048, target_grid=4):
    """Forward pass of SpectralMLP.  spectrum: (B, 300) float32 -> (B, 1)."""
    B, D = spectrum.shape
    assert D == IN_DIM

    tm = _choose_tile(B, tm_max=tm_max, target_grid=target_grid)
    Bp = _round_up(B, tm)

    x = spectrum
    if Bp != B:
        # Only case where anything is materialized: pad a few batch rows so the
        # tile divides evenly.  Padded rows are discarded after the kernel.
        x = jnp.zeros((Bp, IN_DIM), spectrum.dtype).at[:B].set(spectrum)

    out = pl.pallas_call(
        spectral_mlp_kernel,
        out_shape=jax.ShapeDtypeStruct((Bp, OUT_DIM), spectrum.dtype),
        grid_spec=pltpu.PrefetchScalarGridSpec(
            num_scalar_prefetch=0,
            grid=(Bp // tm,),
            in_specs=[
                # (tm, 300): last dim equals full array dim -> legal, no HBM pad.
                pl.BlockSpec((tm, IN_DIM), lambda i: (i, 0)),
                pl.BlockSpec((IN_DIM, HID_DIM), lambda i: (0, 0)),   # W1^T resident
                pl.BlockSpec((1, HID_DIM), lambda i: (0, 0)),        # b1
                pl.BlockSpec((1, HID_DIM), lambda i: (0, 0)),        # w2
                pl.BlockSpec((1, 1), lambda i: (0, 0)),              # b2
            ],
            out_specs=pl.BlockSpec((tm, OUT_DIM), lambda i: (i, 0)),
        ),
        compiler_params=pltpu.CompilerParams(
            dimension_semantics=("parallel",)),
    )(x, params["w1t"], params["b1"], params["w2"], params["b2"])

    return out[:B] if Bp != B else out


def spectral_mlp_forward(batch, params):
    """Mirrors SpectralMLP.forward: consumes (spectrum, fluor_line, fluor_img)."""
    spectrum, _fluor_line, _fluor_img = batch   # fluor_* are unused by the module
    return spectral_mlp(spectrum, params)


def reference_forward(spectrum, w1, b1, w2, b2):
    h = jnp.maximum(spectrum @ w1.T + b1, 0.0)
    return jax.nn.sigmoid(h @ w2.T + b2)


if __name__ == "__main__":
    key = jax.random.PRNGKey(0)
    k_spec, k_line, k_img, k_w1, k_b1, k_w2, k_b2 = jax.random.split(key, 7)

    B = 8
    # batch = (spectrum, fluor_line, fluor_img); only spectrum is consumed.
    spectrum = jax.random.normal(k_spec, (B, IN_DIM), dtype=jnp.float32)
    fluor_line = jax.random.normal(k_line, (B, 16), dtype=jnp.float32)       # unused
    fluor_img = jax.random.normal(k_img, (B, 1, 16, 16), dtype=jnp.float32)  # unused

    # Deterministic parameter init (PyTorch nn.Linear layout + uniform bounds).
    bound1 = 1.0 / jnp.sqrt(IN_DIM)
    w1 = jax.random.uniform(k_w1, (HID_DIM, IN_DIM), jnp.float32, -bound1, bound1)
    b1 = jax.random.uniform(k_b1, (HID_DIM,), jnp.float32, -bound1, bound1)
    bound2 = 1.0 / jnp.sqrt(HID_DIM)
    w2 = jax.random.uniform(k_w2, (OUT_DIM, HID_DIM), jnp.float32, -bound2, bound2)
    b2 = jax.random.uniform(k_b2, (OUT_DIM,), jnp.float32, -bound2, bound2)

    params = prepare_params(w1, b1, w2, b2)   # hoisted, one-time prep
    out = spectral_mlp_forward((spectrum, fluor_line, fluor_img), params)
    out = jax.block_until_ready(out)

    ref = reference_forward(spectrum, w1, b1, w2, b2)
    assert out.shape == (B, OUT_DIM)
    assert jnp.allclose(out, ref, atol=1e-5, rtol=1e-5)

    print("KERNEL_OK")
</pallas_src>

<mosaic_0001>
module attributes {stable_mosaic.version = 11 : i64} {
  func.func @spectral_mlp_kernel(%arg0: i32, %arg1: memref<8x300xf32, #tpu.memory_space<vmem>>, %arg2: memref<300x150xf32, #tpu.memory_space<vmem>>, %arg3: memref<1x150xf32, #tpu.memory_space<vmem>>, %arg4: memref<1x150xf32, #tpu.memory_space<vmem>>, %arg5: memref<1x1xf32, #tpu.memory_space<vmem>>, %arg6: memref<8x1xf32, #tpu.memory_space<vmem>>) attributes {dimension_semantics = [#tpu.dimension_semantics<parallel>], iteration_bounds = array<i64: 1>, scalar_prefetch = 0 : i64, scratch_operands = 0 : i64, tpu.core_type = #tpu.core_type<tc>, window_params = [{transform_indices = @transform_0, window_bounds = array<i64: 8, 300>}, {pipeline_mode = #tpu.pipeline_mode<synchronous>, transform_indices = @transform_1, window_bounds = array<i64: 300, 150>}, {pipeline_mode = #tpu.pipeline_mode<synchronous>, transform_indices = @transform_2, window_bounds = array<i64: 1, 150>}, {pipeline_mode = #tpu.pipeline_mode<synchronous>, transform_indices = @transform_3, window_bounds = array<i64: 1, 150>}, {pipeline_mode = #tpu.pipeline_mode<synchronous>, transform_indices = @transform_4, window_bounds = array<i64: 1, 1>}, {transform_indices = @transform_5, window_bounds = array<i64: 8, 1>}]} {
    %c0 = arith.constant 0 : index
    %c0_0 = arith.constant 0 : index
    %0 = vector.load %arg1[%c0, %c0_0] : memref<8x300xf32, #tpu.memory_space<vmem>>, vector<8x300xf32>
    %c0_1 = arith.constant 0 : index
    %c0_2 = arith.constant 0 : index
    %1 = vector.load %arg2[%c0_1, %c0_2] : memref<300x150xf32, #tpu.memory_space<vmem>>, vector<300x150xf32>
    %cst = arith.constant dense<0.000000e+00> : vector<8x150xf32>
    %2 = tpu.matmul %0, %1, %cst {dimension_numbers = #tpu.dot_dimension_numbers<[1], [0], [0], [1], [0, 0, 1, 1], [], []>} : vector<8x300xf32>, vector<300x150xf32>, vector<8x150xf32> -> vector<8x150xf32>
    %c0_3 = arith.constant 0 : index
    %c0_4 = arith.constant 0 : index
    %3 = vector.load %arg3[%c0_3, %c0_4] : memref<1x150xf32, #tpu.memory_space<vmem>>, vector<1x150xf32>
    %4 = vector.broadcast %3 : vector<1x150xf32> to vector<8x150xf32>
    %5 = arith.addf %2, %4 : vector<8x150xf32>
    %cst_5 = arith.constant 0.000000e+00 : f32
    %6 = vector.broadcast %cst_5 : f32 to vector<8x150xf32>
    %7 = arith.maximumf %5, %6 : vector<8x150xf32>
    %c0_6 = arith.constant 0 : index
    %c0_7 = arith.constant 0 : index
    %8 = vector.load %arg4[%c0_6, %c0_7] : memref<1x150xf32, #tpu.memory_space<vmem>>, vector<1x150xf32>
    %9 = vector.broadcast %8 : vector<1x150xf32> to vector<8x150xf32>
    %10 = arith.mulf %7, %9 : vector<8x150xf32>
    %cst_8 = arith.constant dense<0.000000e+00> : vector<8xf32>
    %11 = vector.multi_reduction <add>, %10, %cst_8 [1] : vector<8x150xf32> to vector<8xf32>
    %12 = vector.shape_cast %11 : vector<8xf32> to vector<8x1xf32>
    %c0_9 = arith.constant 0 : index
    %c0_10 = arith.constant 0 : index
    %13 = vector.load %arg5[%c0_9, %c0_10] : memref<1x1xf32, #tpu.memory_space<vmem>>, vector<1x1xf32>
    %14 = vector.broadcast %13 : vector<1x1xf32> to vector<8x1xf32>
    %15 = arith.addf %12, %14 : vector<8x1xf32>
    %16 = arith.negf %15 : vector<8x1xf32>
    %17 = math.exp %16 : vector<8x1xf32>
    %cst_11 = arith.constant 1.000000e+00 : f32
    %18 = vector.broadcast %cst_11 : f32 to vector<8x1xf32>
    %19 = arith.addf %18, %17 : vector<8x1xf32>
    %20 = arith.divf %18, %19 : vector<8x1xf32>
    %c0_12 = arith.constant 0 : index
    %c0_13 = arith.constant 0 : index
    %21 = vector.load %arg6[%c0_12, %c0_13] : memref<8x1xf32, #tpu.memory_space<vmem>>, vector<8x1xf32>
    tpu.vector_store %arg6[%c0_12, %c0_13], %20 {strides = array<i32>} : memref<8x1xf32, #tpu.memory_space<vmem>>, vector<8x1xf32>,
    return
  }
  func.func @transform_0(%arg0: i32) -> (i32, i32) {
    %c0_i32 = arith.constant 0 : i32
    %c0_i32_0 = arith.constant 0 : i32
    return %arg0, %c0_i32 : i32, i32
  }
  func.func @transform_1(%arg0: i32) -> (i32, i32) {
    %c0_i32 = arith.constant 0 : i32
    %c0_i32_0 = arith.constant 0 : i32
    %c0_i32_1 = arith.constant 0 : i32
    return %c0_i32, %c0_i32_0 : i32, i32
  }
  func.func @transform_2(%arg0: i32) -> (i32, i32) {
    %c0_i32 = arith.constant 0 : i32
    %c0_i32_0 = arith.constant 0 : i32
    %c0_i32_1 = arith.constant 0 : i32
    return %c0_i32, %c0_i32_0 : i32, i32
  }
  func.func @transform_3(%arg0: i32) -> (i32, i32) {
    %c0_i32 = arith.constant 0 : i32
    %c0_i32_0 = arith.constant 0 : i32
    %c0_i32_1 = arith.constant 0 : i32
    return %c0_i32, %c0_i32_0 : i32, i32
  }
  func.func @transform_4(%arg0: i32) -> (i32, i32) {
    %c0_i32 = arith.constant 0 : i32
    %c0_i32_0 = arith.constant 0 : i32
    %c0_i32_1 = arith.constant 0 : i32
    return %c0_i32, %c0_i32_0 : i32, i32
  }
  func.func @transform_5(%arg0: i32) -> (i32, i32) {
    %c0_i32 = arith.constant 0 : i32
    %c0_i32_0 = arith.constant 0 : i32
    return %arg0, %c0_i32 : i32, i32
  }
}

</mosaic_0001>

<bundles_post_ra>
// kernel: tpu_custom_call.1
= control target key start
LH: loop header
LB: loop body
LE: loop exit
PB: predicated region body
PF: predicated region fallthrough
CT: control target
= control target key end

     0   :  { %vm111_vm0 = vcmask 1043456   ;;  %vm107_vm1 = vcmask 359424   ;;  %vm248_vm2 = vcmask 179200   ;;  %vm277_vm6 = vcmask 7168   ;;  %s576_s1 = inlined_call_operand.vmem [shape: f32[300,150], index: 1, kind: input, shape index: {}]   ;;  %s577_s0 = inlined_call_operand.vmem [shape: f32[8,300], index: 0, kind: input, shape index: {}]   ;;  %s578_s4 = inlined_call_operand.<no memory space> [shape: f32[1,1], index: 4, kind: input, shape index: {}]   ;;  %s579_s2 = inlined_call_operand.vmem [shape: f32[1,150], index: 2, kind: input, shape index: {}]   ;;  %s580_s3 = inlined_call_operand.vmem [shape: f32[1,150], index: 3, kind: input, shape index: {}]   ;;  %s581_s5 = inlined_call_operand.vmem [shape: f32[8,1], index: 5, kind: output, shape index: {}]  }
   0x1   :  { %v99_v0 = vld [vmem:[%s576_s1 + $0x250] sm:$0xf]  ;;  %v97_v1 = vld [vmem:[%s576_s1 + $0x240] sm:$0xff]  ;;  %v56_v8 = vld [vmem:[%s576_s1 + $0xf8] sm:$0xff] }
   0x2   :  { %283 = vmatpush.msk.msra.mxu2 %vm111_vm0, %v99_v0  ;;  %v55_v2 = vld [vmem:[%s576_s1 + $0xf0] sm:$0xff]  ;;  %v53_v3 = vld [vmem:[%s576_s1 + $0xe0] sm:$0xff]  ;;  %178 = vmatpush.msra.mxu3 %v56_v8  ;;  %v54_v11 = vld [vmem:[%s576_s1 + $0xe8] sm:$0xff] }
   0x3   :  { %v95_v4 = vld [vmem:[%s576_s1 + $0x230] sm:$0xff]  ;;  %118 = vmatpush.msra.mxu0 %v55_v2  ;;  %v85_v7 = vld [vmem:[%s576_s1 + $0x1e0] sm:$0xff]  ;;  %v52_v15 = vld [vmem:[%s576_s1 + $0xd8] sm:$0xff] }
   0x4   :  { %v87_v5 = vld [vmem:[%s576_s1 + $0x1f0] sm:$0xff]  ;;  %169 = vmatpush.msra.mxu2 %v97_v1  ;;  %v93_v9 = vld [vmem:[%s576_s1 + $0x220] sm:$0xff]  ;;  %179 = vmatpush.msra.mxu3 %v54_v11  ;;  %v50_v17 = vld [vmem:[%s576_s1 + $0xc8] sm:$0xff] }
   0x5   :  { %138 = vmatpush.msra.mxu1 %v87_v5  ;;  %v51_v6 = vld [vmem:[%s576_s1 + $0xd0] sm:$0xff]  ;;  %119 = vmatpush.msra.mxu0 %v53_v3  ;;  %v49_v12 = vld [vmem:[%s576_s1 + $0xc0] sm:$0xff]  ;;  %v88_v20 = vld [vmem:[%s576_s1 + $0x1f8] sm:$0xff] }
   0x6   :  { %v83_v10 = vld [vmem:[%s576_s1 + $0x1d0] sm:$0xff]  ;;  %170 = vmatpush.msra.mxu2 %v95_v4  ;;  %v81_v14 = vld [vmem:[%s576_s1 + $0x1c0] sm:$0xff]  ;;  %180 = vmatpush.msra.mxu3 %v52_v15  ;;  %v48_v23 = vld [vmem:[%s576_s1 + $0xb8] sm:$0xff]  ;;  %v10_v15 = vstv %s578_s4 }
   0x7   :  { %139 = vmatpush.msra.mxu1 %v85_v7  ;;  %v91_v13 = vld [vmem:[%s576_s1 + $0x210] sm:$0xff]  ;;  %120 = vmatpush.msra.mxu0 %v51_v6  ;;  %v89_v18 = vld [vmem:[%s576_s1 + $0x200] sm:$0xff]  ;;  %v86_v24 = vld [vmem:[%s576_s1 + $0x1e8] sm:$0xff]  ;;  %11 = vst [vmem:[#allocation2] sm:$0x1] %v10_v15 }
   0x8   :  { %171 = vmatpush.msra.mxu2 %v93_v9  ;;  %v47_v16 = vld [vmem:[%s576_s1 + $0xb0] sm:$0xff]  ;;  %v45_v21 = vld [vmem:[%s576_s1 + $0xa0] sm:$0xff]  ;;  %181 = vmatpush.msra.mxu3 %v50_v17  ;;  %v46_v27 = vld [vmem:[%s576_s1 + $0xa8] sm:$0xff] }
   0x9   :  { %140 = vmatpush.msra.mxu1 %v83_v10  ;;  %121 = vmatpush.msra.mxu0 %v49_v12  ;;  %v79_v19 = vld [vmem:[%s576_s1 + $0x1b0] sm:$0xff]  ;;  %v77_v22 = vld [vmem:[%s576_s1 + $0x1a0] sm:$0xff]  ;;  %v84_v28 = vld [vmem:[%s576_s1 + $0x1d8] sm:$0xff] }
   0xa   :  { %172 = vmatpush.msra.mxu2 %v91_v13  ;;  %v43_v25 = vld [vmem:[%s576_s1 + $0x90] sm:$0xff]  ;;  %182 = vmatpush.msra.mxu3 %v48_v23  ;;  %v41_v29 = vld [vmem:[%s576_s1 + $0x80] sm:$0xff]  ;;  %v44_v31 = vld [vmem:[%s576_s1 + $0x98] sm:$0xff] }
   0xb   :  { %141 = vmatpush.msra.mxu1 %v81_v14  ;;  %122 = vmatpush.msra.mxu0 %v47_v16  ;;  %v75_v26 = vld [vmem:[%s576_s1 + $0x190] sm:$0xff]  ;;  %v73_v30 = vld [vmem:[%s576_s1 + $0x180] sm:$0xff]  ;;  %v82_v32 = vld [vmem:[%s576_s1 + $0x1c8] sm:$0xff] }
   0xc   :  { %173 = vmatpush.msra.mxu2 %v89_v18  ;;  %183 = vmatpush.msra.mxu3 %v46_v27  ;;  %v39_v33 = vld [vmem:[%s576_s1 + $0x70] sm:$0xff]  ;;  %v42_v35 = vld [vmem:[%s576_s1 + $0x88] sm:$0xff]  ;;  %v80_v36 = vld [vmem:[%s576_s1 + $0x1b8] sm:$0xff] }
   0xd   :  { %142 = vmatpush.msra.mxu1 %v79_v19  ;;  %123 = vmatpush.msra.mxu0 %v45_v21  ;;  %v71_v34 = vld [vmem:[%s576_s1 + $0x170] sm:$0xff]  ;;  %v37_v37 = vld [vmem:[%s576_s1 + $0x60] sm:$0xff]  ;;  %v40_v39 = vld [vmem:[%s576_s1 + $0x78] sm:$0xff] }
   0xe   :  { %198 = vmatpush.msrb.mxu2 %v88_v20  ;;  %184 = vmatpush.msra.mxu3 %v44_v31  ;;  %v69_v38 = vld [vmem:[%s576_s1 + $0x160] sm:$0xff]  ;;  %v78_v40 = vld [vmem:[%s576_s1 + $0x1a8] sm:$0xff]  ;;  %v35_v41 = vld [vmem:[%s576_s1 + $0x50] sm:$0xff] }
   0xf   :  { %143 = vmatpush.msra.mxu1 %v77_v22  ;;  %124 = vmatpush.msra.mxu0 %v43_v25  ;;  %v67_v42 = vld [vmem:[%s576_s1 + $0x150] sm:$0xff]  ;;  %v38_v43 = vld [vmem:[%s576_s1 + $0x68] sm:$0xff]  ;;  %v76_v44 = vld [vmem:[%s576_s1 + $0x198] sm:$0xff] }
  0x10   :  { %199 = vmatpush.msrb.mxu2 %v86_v24  ;;  %185 = vmatpush.msra.mxu3 %v42_v35  ;;  %v33_v45 = vld [vmem:[%s576_s1 + $0x40] sm:$0xff]  ;;  %v36_v47 = vld [vmem:[%s576_s1 + $0x58] sm:$0xff]  ;;  %v74_v48 = vld [vmem:[%s576_s1 + $0x188] sm:$0xff] }
  0x11   :  { %144 = vmatpush.msra.mxu1 %v75_v26  ;;  %125 = vmatpush.msra.mxu0 %v41_v29  ;;  %v65_v46 = vld [vmem:[%s576_s1 + $0x140] sm:$0xff]  ;;  %v31_v49 = vld [vmem:[%s576_s1 + $0x30] sm:$0xff]  ;;  %v34_v51 = vld [vmem:[%s576_s1 + $0x48] sm:$0xff] }
  0x12   :  { %200 = vmatpush.msrb.mxu2 %v84_v28  ;;  %186 = vmatpush.msra.mxu3 %v40_v39  ;;  %v63_v50 = vld [vmem:[%s576_s1 + $0x130] sm:$0xff]  ;;  %v72_v52 = vld [vmem:[%s576_s1 + $0x178] sm:$0xff]  ;;  %v29_v53 = vld [vmem:[%s576_s1 + $0x20] sm:$0xff] }
  0x13   :  { %145 = vmatpush.msra.mxu1 %v73_v30  ;;  %126 = vmatpush.msra.mxu0 %v39_v33  ;;  %v61_v54 = vld [vmem:[%s576_s1 + $0x120] sm:$0xff]  ;;  %v32_v55 = vld [vmem:[%s576_s1 + $0x38] sm:$0xff]  ;;  %v70_v56 = vld [vmem:[%s576_s1 + $0x168] sm:$0xff] }
  0x14   :  { %201 = vmatpush.msrb.mxu2 %v82_v32  ;;  %187 = vmatpush.msra.mxu3 %v38_v43  ;;  %v27_v57 = vld [vmem:[%s576_s1 + $0x10] sm:$0xff]  ;;  %v68_v60 = vld [vmem:[%s576_s1 + $0x158] sm:$0xff]  ;;  %v25_v61 = vld [vmem:[%s576_s1] sm:$0xff] }
  0x15   :  { %146 = vmatpush.msra.mxu1 %v71_v34  ;;  %127 = vmatpush.msra.mxu0 %v37_v37  ;;  %v24_v58 = vld [vmem:[%s577_s0 + $0x10] sm:$0xff]  ;;  %v30_v62 = vld [vmem:[%s576_s1 + $0x28] sm:$0xff]  ;;  %v22_v63 = vld [vmem:[%s577_s0] sm:$0xff] }
  0x16   :  { %202 = vmatpush.msrb.mxu2 %v80_v36  ;;  %188 = vmatpush.msra.mxu3 %v36_v47  ;;  %v59_v59 = vld [vmem:[%s576_s1 + $0x110] sm:$0xff]  ;;  %v66_v0 = vld [vmem:[%s576_s1 + $0x148] sm:$0xff]  ;;  %v57_v1 = vld [vmem:[%s576_s1 + $0x100] sm:$0xff] }
  0x17   :  { %147 = vmatpush.msra.mxu1 %v69_v38  ;;  %128 = vmatpush.msra.mxu0 %v35_v41  ;;  %v28_v2 = vld [vmem:[%s576_s1 + $0x18] sm:$0xff]  ;;  %v23_v3 = vld [vmem:[%s577_s0 + $0x8] sm:$0xff]  ;;  %v101_v16 = vld [vmem:[%s579_s2] sm:$0x3] }
  0x18   :  { %203 = vmatpush.msrb.mxu2 %v78_v40  ;;  %189 = vmatpush.msra.mxu3 %v34_v51  ;;  %v64_v4 = vld [vmem:[%s576_s1 + $0x138] sm:$0xff]  ;;  %v26_v6 = vld [vmem:[%s576_s1 + $0x8] sm:$0xff]  ;;  %v103_v17 = vperm.slane %v101_v16, 0  ;;  %v104_v22 = vperm.slane %v101_v16, 1  ;;  %v240_v30 = vld [vmem:[%s580_s3] sm:$0x3] }
  0x19   :  { %148 = vmatpush.msra.mxu1 %v67_v42  ;;  %129 = vmatpush.msra.mxu0 %v33_v45  ;;  %v100_v5 = vld [vmem:[%s576_s1 + $0x258] sm:$0xf]  ;;  %v62_v7 = vld [vmem:[%s576_s1 + $0x128] sm:$0xff]  ;;  %v243_v32 = vperm.slane %v240_v30, 1  ;;  %v242_v34 = vperm.slane %v240_v30, 0 }
  0x1a   :  { %204 = vmatpush.msrb.mxu2 %v76_v44  ;;  %190 = vmatpush.msra.mxu3 %v32_v55  ;;  %v98_v8 = vld [vmem:[%s576_s1 + $0x248] sm:$0xff]  ;;  %v60_v9 = vld [vmem:[%s576_s1 + $0x118] sm:$0xff]  ;;  %v288_v40 = vld [vmem:[#allocation2] ss:$0 sm:$0xff] }
  0x1b   :  { %149 = vmatpush.msra.mxu1 %v65_v46  ;;  %130 = vmatpush.msra.mxu0 %v31_v49  ;;  %v96_v10 = vld [vmem:[%s576_s1 + $0x238] sm:$0xff]  ;;  %v58_v11 = vld [vmem:[%s576_s1 + $0x108] sm:$0xff] }
  0x1c   :  { %205 = vmatpush.msrb.mxu2 %v74_v48  ;;  %191 = vmatpush.msra.mxu3 %v30_v62  ;;  %v94_v12 = vld [vmem:[%s576_s1 + $0x228] sm:$0xff]  ;;  %v92_v13 = vld [vmem:[%s576_s1 + $0x218] sm:$0xff] }
  0x1d   :  { %150 = vmatpush.msra.mxu1 %v63_v50  ;;  %131 = vmatpush.msra.mxu0 %v29_v53  ;;  %v90_v14 = vld [vmem:[%s576_s1 + $0x208] sm:$0xff] }
  0x1e   :  { %206 = vmatpush.msrb.mxu2 %v72_v52  ;;  %192 = vmatpush.msra.mxu3 %v28_v2 }
  0x1f   :  { %151 = vmatpush.msra.mxu1 %v61_v54  ;;  %132 = vmatpush.msra.mxu0 %v27_v57 }
  0x20   :  { %207 = vmatpush.msrb.mxu2 %v70_v56  ;;  %193 = vmatpush.msra.mxu3 %v26_v6 }
  0x21   :  { %284 = vmatmul.msk.f32.vlgmr.msra.gmra.mxu2 %vm107_vm1, %v24_v58  ;;  %152 = vmatpush.msra.mxu1 %v59_v59 }
  0x22   :  { %208 = vmatpush.msrb.mxu2 %v68_v60  ;;  %133 = vmatpush.msra.mxu0 %v25_v61 }
  0x23   :  { %134 = vmatmul.f32.vlgmr.msra.gmra.mxu0 %v22_v63  ;;  %153 = vmatpush.msra.mxu1 %v57_v1 }
  0x24   :  { %209 = vmatpush.msrb.mxu2 %v66_v0  ;;  %154 = vmatmul.f32.vlgmr.msra.gmra.mxu1 %v23_v3 }
  0x25   :  { %285 = vmatpush.msk.msrb.mxu0 %vm111_vm0, %v100_v5  ;;  %194 = vmatmul.f32.vlgmr.msra.gmra.mxu3 %v22_v63 }
  0x26   :  { %210 = vmatpush.msrb.mxu2 %v64_v4 }
  0x27   :  { %229 = vmatpush.msrb.mxu0 %v98_v8 }
  0x28   :  { %211 = vmatpush.msrb.mxu2 %v62_v7 }
  0x29   :  { %230 = vmatpush.msrb.mxu0 %v96_v10 }
  0x2a   :  { %212 = vmatpush.msrb.mxu2 %v60_v9 }
  0x2b   :  { %231 = vmatpush.msrb.mxu0 %v94_v12 }
  0x2c   :  { %213 = vmatpush.msrb.mxu2 %v58_v11 }
  0x2d   :  { %214 = vmatmul.f32.vlgmr.msrb.gmra.mxu2 %v23_v3  ;;  %232 = vmatpush.msrb.mxu0 %v92_v13 }
  0x2f   :  { %233 = vmatpush.msrb.mxu0 %v90_v14 }
  0x30   :  { %286 = vmatmul.msk.f32.vlgmr.msrb.gmra.mxu0 %vm107_vm1, %v24_v58 }
  0xa0   :  { %v135_v18 = vpop.f32.mrf.mxu0 }
  0xa1   :  { %v136_v20 = vadd.f32 %v135_v18, %v103_v17  ;;  %v155_v21 = vpop.f32.mrf.mxu1 }
  0xa3   :  { %v156_v24 = vadd.f32 %v155_v21, %v136_v20 }
  0xa4   :  { %v175_v19 = vpop.f32.mrf.mxu2 }
  0xa5   :  { %v176_v26 = vadd.f32 %v175_v19, %v156_v24 }
  0xa7   :  { %v238_v33 = vmax.f32 %v176_v26, 0.0 }
  0xa8   :  { %v195_v23 = vpop.f32.mrf.mxu3 }
  0xa9   :  { %v196_v25 = vadd.f32 %v195_v23, %v104_v22  ;;  %v246_v37 = vmul.f32 %v242_v34, %v238_v33 }
  0xad   :  { %v235_v28 = vpop.f32.mrf.mxu0 }
  0xb0   :  { %v215_v27 = vpop.f32.mrf.mxu2 }
  0xb1   :  { %v216_v29 = vadd.f32 %v215_v27, %v196_v25 }
  0xb3   :  { %v236_v31 = vadd.f32 %v235_v28, %v216_v29 }
  0xb5   :  { %v239_v35 = vmax.f32 %v236_v31, 0.0 }
  0xb7   :  { %v247_v36 = vmul.f32 %v243_v32, %v239_v35 }
  0xb9   :  { %v249_v38 = vsel %vm248_vm2, %v247_v36, 0.0 }
  0xba   :  { %v250_v39 = vadd.f32 %v249_v38, %v246_v37 }
  0xbc   :  { %251 = vadd.xlane.f32.xlu0 %v250_v39 }
 0x12f   :  { %v252_v41 = vpop.xlane.xlu0 %251 }
 0x130   :  { %v257_v42 = vadd.f32 %v288_v40, %v252_v41 }
 0x132   :  { %v287_v43 = vmul.f32 -1.442695, %v257_v42 }
 0x134   :  { %289 = vpow2.f32 %v287_v43 }
 0x13a   :  { %v290_v44 = vpop.eup %289 }
 0x13b   :  { %v261_v45 = vadd.f32 1.0, %v290_v44 }
 0x13d   :  { %291 = vrcp.f32 %v261_v45  ;;  %v273_v49 = vand.u32 2147483648, %v261_v45  ;;  %v271_v51 = vand.u32 2147483647, %v261_v45  ;;  %vm267_vm4 = vweird.f32 %v261_v45 }
 0x13f   :  { %v274_v53 = vor.u32 1.1754944e-38, %v273_v49  ;;  %vm272_vm7 = vcmp.eq.f32.partialorder %v271_v51, 8.507059e+37 }
 0x143   :  { %v292_v46 = vpop.eup %291 }
 0x144   :  { %v263_v47 = vmul.f32 %v292_v46, %v261_v45  ;;  %vm268_vm3 = vweird.f32 %v292_v46 }
 0x145   :  { %vm269_vm5 = vmor %vm267_vm4, %vm268_vm3 }
 0x146   :  { %v264_v48 = vsub.f32 1.0, %v263_v47 }
 0x148   :  { %v265_v50 = vmul.f32 %v292_v46, %v264_v48 }
 0x14a   :  { %v266_v52 = vadd.f32 %v292_v46, %v265_v50 }
 0x14c   :  { %v270_v54 = vsel %vm269_vm5, %v292_v46, %v266_v52 }
 0x14d   :  { %v275_v55 = vsel %vm272_vm7, %v274_v53, %v270_v54 }
 0x14e   :  { %278 = vst.msk [vmem:[%s581_s5] sm:$0xff] %vm277_vm6, %v275_v55 }

</bundles_post_ra>
